<compile_context>
chip_gen: v7x
topology: tpu7x:2x2x1
jax: 0.10.0
libtpu: 0.0.40
codegen_flags: <defaults>
</compile_context>

<pallas_src>
import functools

import jax
import jax.numpy as jnp
from jax.experimental import pallas as pl
from jax.experimental.pallas import tpu as pltpu


def _round_up(x, m):
    return (x + m - 1) // m * m


def _elu(x):
    # ELU(alpha=1): x if x > 0 else exp(x) - 1  (clamp arg of exp for safety)
    return jnp.where(x > 0, x, jnp.exp(jnp.minimum(x, 0.0)) - 1.0)


def mdn_kernel(x_ref, w1_ref, b1_ref, w2_ref, b2_ref, out_ref, *, ko):
    """One batch tile of the fused MDN forward.

    x_ref   : [TB, in_dim]        compute dtype (bf16 or f32)
    w1_ref  : [in_dim, 2*hidden]  fused [w1_norm | w1_cat], compute dtype
    b1_ref  : [1, 2*hidden]       f32
    w2_ref  : [2*hidden, P]       block matrix routing hidden -> (mean|logstd|logit),
                                  zero-padded to P (multiple of 128) lanes
    b2_ref  : [1, P]              f32
    out_ref : [TB, P]             out dtype slab: [mean | std | logits | 0-pad]
    """
    x = x_ref[...]

    # ---- fused first layer: one MXU sequence for both subnetworks ----
    h = jnp.dot(x, w1_ref[...], preferred_element_type=jnp.float32) + b1_ref[...]
    h = _elu(h)  # f32 VPU/EUP math
    # TODO(synk): nn.Dropout() is stochastic in train mode; forward here is the
    # deterministic eval-mode pass (dropout = identity).

    # ---- fused second layer: one GEMM -> lane-contiguous output slab ----
    slab = (jnp.dot(h.astype(w2_ref.dtype), w2_ref[...],
                    preferred_element_type=jnp.float32) + b2_ref[...])

    # std = exp(log_std) only on lanes [ko, 2*ko). Keep the SELECT (not
    # mask * exp): exp() of the discarded mean/logit lanes may overflow to +inf
    # and inf*0 would be NaN, whereas jnp.where simply drops those lanes.
    lane = jax.lax.broadcasted_iota(jnp.int32, slab.shape, 1)
    is_logstd = jnp.logical_and(lane >= ko, lane < 2 * ko)
    out_ref[...] = jnp.where(is_logstd, jnp.exp(slab), slab).astype(out_ref.dtype)


def _fuse_params(params, hidden_dim, ko, lane_pad):
    """Build fused weights: W1=[w1n|w1c]; W2 block matrix with columns
    [mean | log_std | logits | zero-pad] so the kernel never slices lanes."""
    (w1n, b1n, w2n, b2n, w1c, b1c, w2c, b2c) = params
    H = hidden_dim
    P = lane_pad

    w1 = jnp.concatenate([w1n, w1c], axis=1)          # [in_dim, 2H]
    b1 = jnp.concatenate([b1n, b1c], axis=1)          # [1, 2H]

    w2 = jnp.zeros((2 * H, P), jnp.float32)
    w2 = w2.at[:H, :2 * ko].set(w2n)                  # cols 0:ko mean, ko:2ko log_std
    w2 = w2.at[H:, 2 * ko:3 * ko].set(w2c)            # cols 2ko:3ko logits
    b2 = jnp.zeros((1, P), jnp.float32)
    b2 = b2.at[:, :2 * ko].set(b2n)
    b2 = b2.at[:, 2 * ko:3 * ko].set(b2c)
    return w1, b1, w2, b2


def mdn_forward(x, params, out_dim, n_components, hidden_dim,
                compute_dtype=jnp.bfloat16, out_dtype=None, batch_tile=2048):
    """Runs the MDN forward pass. Returns (logits, mean, std), each reshaped to
    [B, out_dim, n_components] to mirror the torch .view()."""
    if out_dtype is None:
        # bf16 output halves the dominant writeback stream in the default path;
        # pass out_dtype=jnp.float32 if downstream log-prob math needs it.
        out_dtype = compute_dtype
    B, in_dim = x.shape
    ko = n_components * out_dim
    P = _round_up(3 * ko, 128)        # lane-dense output slab (unmasked stores)

    w1, b1, w2, b2 = _fuse_params(params, hidden_dim, ko, P)

    # --- batch tiling -------------------------------------------------------
    #  * multiple of 16 rows (bf16 sublane packing),
    #  * never much bigger than B (limits pure-padding rows for awkward B),
    #  * large by default (grid-overhead ~0.35us/step >> tiny per-tile DMA),
    #  * >= 2 grid steps when possible so v7x's 2 TensorCores both get work
    #    under dimension_semantics=("parallel",); harmless on 1-TC v5e/v6e.
    tb = _round_up(min(batch_tile, _round_up(B, 16)), 16)
    if _round_up(B, tb) // tb < 2 and B > 16:
        tb = _round_up((tb + 1) // 2, 16)
    B_pad = _round_up(B, tb)
    if B_pad != B:
        x = jnp.pad(x, ((0, B_pad - B), (0, 0)))
    grid = (B_pad // tb,)

    # bf16 MXU operands (f32 accumulation inside the kernel); biases stay f32.
    xk = x.astype(compute_dtype)
    w1k = w1.astype(compute_dtype)
    w2k = w2.astype(compute_dtype)

    in_isz = jnp.dtype(compute_dtype).itemsize
    out_isz = jnp.dtype(out_dtype).itemsize

    # Explicit scoped-VMEM budget: double-buffered x/out tiles + single-buffered
    # weights/biases + slack. Default scoped VMEM (16 MiB v5e / 32 MiB v6e,v7x)
    # would otherwise cap the batch tile.
    vmem_need = (2 * tb * in_dim * in_isz
                 + 2 * tb * P * out_isz
                 + (w1k.size + w2k.size) * in_isz
                 + (b1.size + b2.size) * 4)
    vmem_limit = int(min(max(2 * vmem_need + (4 << 20), 32 << 20), 64 << 20))

    cost = pl.CostEstimate(
        flops=2 * B_pad * in_dim * (2 * hidden_dim)
              + 2 * B_pad * (2 * hidden_dim) * P,
        transcendentals=B_pad * (2 * hidden_dim + P),
        bytes_accessed=(xk.size * in_isz
                        + (w1k.size + w2k.size) * in_isz
                        + (b1.size + b2.size) * 4
                        + B_pad * P * out_isz),
    )

    # Grid-invariant operands are fetched once -> single-buffer them to free VMEM.
    resident = dict(pipeline_mode=pl.Buffered(1))

    slab = pl.pallas_call(
        functools.partial(mdn_kernel, ko=ko),
        out_shape=jax.ShapeDtypeStruct((B_pad, P), out_dtype),
        grid=grid,
        in_specs=[
            pl.BlockSpec((tb, in_dim), lambda i: (i, 0)),
            pl.BlockSpec(w1k.shape, lambda i: (0, 0), **resident),
            pl.BlockSpec(b1.shape, lambda i: (0, 0), **resident),
            pl.BlockSpec(w2k.shape, lambda i: (0, 0), **resident),
            pl.BlockSpec(b2.shape, lambda i: (0, 0), **resident),
        ],
        out_specs=pl.BlockSpec((tb, P), lambda i: (i, 0)),
        compiler_params=pltpu.CompilerParams(
            dimension_semantics=("parallel",),
            vmem_limit_bytes=vmem_limit),
        cost_estimate=cost,
    )(xk, w1k, b1, w2k, b2)

    # Split/reshape glue in the wrapper (matches torch split + .view()).
    # TODO(synk): callers that consume the packed form should take `slab`
    # directly — these three slices make XLA re-read it from HBM.
    slab = slab[:B]
    mean = slab[:, :ko].reshape(B, out_dim, n_components)
    std = slab[:, ko:2 * ko].reshape(B, out_dim, n_components)
    logits = slab[:, 2 * ko:3 * ko].reshape(B, out_dim, n_components)
    return logits, mean, std


def init_params(key, in_dim, out_dim, hidden_dim, n_components):
    ks = jax.random.split(key, 8)
    ko = n_components * out_dim

    def lin(kw, kb, fan_in, fan_out):
        bound = 1.0 / jnp.sqrt(fan_in)
        w = jax.random.uniform(kw, (fan_in, fan_out), jnp.float32, -bound, bound)
        b = jax.random.uniform(kb, (1, fan_out), jnp.float32, -bound, bound)
        return w, b

    w1n, b1n = lin(ks[0], ks[1], in_dim, hidden_dim)
    w2n, b2n = lin(ks[2], ks[3], hidden_dim, 2 * ko)
    w1c, b1c = lin(ks[4], ks[5], in_dim, hidden_dim)
    w2c, b2c = lin(ks[6], ks[7], hidden_dim, ko)
    return (w1n, b1n, w2n, b2n, w1c, b1c, w2c, b2c)


def mdn_reference(x, params, out_dim, n_components):
    """Pure-JAX f32 reference mirroring the PyTorch module."""
    (w1n, b1n, w2n, b2n, w1c, b1c, w2c, b2c) = params
    B = x.shape[0]
    hi = jax.lax.Precision.HIGHEST
    h = _elu(jnp.dot(x, w1n, precision=hi) + b1n)
    npar = jnp.dot(h, w2n, precision=hi) + b2n
    half = npar.shape[1] // 2
    mean = npar[:, :half].reshape(B, out_dim, n_components)
    std = jnp.exp(npar[:, half:]).reshape(B, out_dim, n_components)
    hc = _elu(jnp.dot(x, w1c, precision=hi) + b1c)
    logits = (jnp.dot(hc, w2c, precision=hi) + b2c).reshape(B, out_dim, n_components)
    return logits, mean, std


if __name__ == "__main__":
    B, in_dim, hidden_dim, out_dim, n_components = 8, 16, 32, 4, 4

    key = jax.random.PRNGKey(0)
    kx, kp = jax.random.split(key)
    x = jax.random.normal(kx, (B, in_dim), jnp.float32)
    params = init_params(kp, in_dim, out_dim, hidden_dim, n_components)

    rl, rm, rs = mdn_reference(x, params, out_dim, n_components)

    # f32 MXU-operand / f32-output path: tight correctness check.
    lo, mo, so = mdn_forward(x, params, out_dim, n_components, hidden_dim,
                             compute_dtype=jnp.float32)
    jax.block_until_ready((lo, mo, so))
    assert lo.shape == (B, out_dim, n_components)
    assert jnp.allclose(lo, rl, atol=1e-4, rtol=1e-4)
    assert jnp.allclose(mo, rm, atol=1e-4, rtol=1e-4)
    assert jnp.allclose(so, rs, atol=1e-4, rtol=1e-4)

    # bf16 MXU-operand / bf16-output path (default perf config): relaxed tolerance.
    lb, mb, sb = mdn_forward(x, params, out_dim, n_components, hidden_dim)
    jax.block_until_ready((lb, mb, sb))
    assert lb.shape == (B, out_dim, n_components)
    assert jnp.allclose(lb.astype(jnp.float32), rl, atol=5e-2, rtol=5e-2)
    assert jnp.allclose(mb.astype(jnp.float32), rm, atol=5e-2, rtol=5e-2)
    assert jnp.allclose(sb.astype(jnp.float32), rs, atol=5e-2, rtol=5e-2)

    print("KERNEL_OK")
</pallas_src>

<mosaic_0001>
module attributes {stable_mosaic.version = 11 : i64} {
  func.func @mdn_kernel(%arg0: i32, %arg1: memref<16x16xf32, #tpu.memory_space<vmem>>, %arg2: memref<16x64xf32, #tpu.memory_space<vmem>>, %arg3: memref<1x64xf32, #tpu.memory_space<vmem>>, %arg4: memref<64x128xf32, #tpu.memory_space<vmem>>, %arg5: memref<1x128xf32, #tpu.memory_space<vmem>>, %arg6: memref<16x128xf32, #tpu.memory_space<vmem>>) attributes {dimension_semantics = [#tpu.dimension_semantics<parallel>], iteration_bounds = array<i64: 1>, scalar_prefetch = 0 : i64, scratch_operands = 0 : i64, tpu.core_type = #tpu.core_type<tc>, window_params = [{transform_indices = @transform_0, window_bounds = array<i64: 16, 16>}, {pipeline_mode = #tpu.pipeline_mode<synchronous>, transform_indices = @transform_1, window_bounds = array<i64: 16, 64>}, {pipeline_mode = #tpu.pipeline_mode<synchronous>, transform_indices = @transform_2, window_bounds = array<i64: 1, 64>}, {pipeline_mode = #tpu.pipeline_mode<synchronous>, transform_indices = @transform_3, window_bounds = array<i64: 64, 128>}, {pipeline_mode = #tpu.pipeline_mode<synchronous>, transform_indices = @transform_4, window_bounds = array<i64: 1, 128>}, {transform_indices = @transform_5, window_bounds = array<i64: 16, 128>}]} {
    %c0 = arith.constant 0 : index
    %c0_0 = arith.constant 0 : index
    %0 = vector.load %arg1[%c0, %c0_0] : memref<16x16xf32, #tpu.memory_space<vmem>>, vector<16x16xf32>
    %c0_1 = arith.constant 0 : index
    %c0_2 = arith.constant 0 : index
    %1 = vector.load %arg2[%c0_1, %c0_2] : memref<16x64xf32, #tpu.memory_space<vmem>>, vector<16x64xf32>
    %cst = arith.constant dense<0.000000e+00> : vector<16x64xf32>
    %2 = tpu.matmul %0, %1, %cst {dimension_numbers = #tpu.dot_dimension_numbers<[1], [0], [0], [1], [0, 0, 1, 1], [], []>} : vector<16x16xf32>, vector<16x64xf32>, vector<16x64xf32> -> vector<16x64xf32>
    %c0_3 = arith.constant 0 : index
    %c0_4 = arith.constant 0 : index
    %3 = vector.load %arg3[%c0_3, %c0_4] : memref<1x64xf32, #tpu.memory_space<vmem>>, vector<1x64xf32>
    %4 = vector.broadcast %3 : vector<1x64xf32> to vector<16x64xf32>
    %5 = arith.addf %2, %4 : vector<16x64xf32>
    %cst_5 = arith.constant 0.000000e+00 : f32
    %6 = vector.broadcast %cst_5 : f32 to vector<16x64xf32>
    %7 = arith.cmpf ogt, %5, %6 : vector<16x64xf32>
    %cst_6 = arith.constant 0.000000e+00 : f32
    %8 = vector.broadcast %cst_6 : f32 to vector<16x64xf32>
    %9 = arith.minimumf %5, %8 : vector<16x64xf32>
    %10 = math.exp %9 : vector<16x64xf32>
    %cst_7 = arith.constant 1.000000e+00 : f32
    %11 = vector.broadcast %cst_7 : f32 to vector<16x64xf32>
    %12 = arith.subf %10, %11 : vector<16x64xf32>
    %13 = arith.select %7, %5, %12 : vector<16x64xi1>, vector<16x64xf32>
    %c0_8 = arith.constant 0 : index
    %c0_9 = arith.constant 0 : index
    %14 = vector.load %arg4[%c0_8, %c0_9] : memref<64x128xf32, #tpu.memory_space<vmem>>, vector<64x128xf32>
    %cst_10 = arith.constant dense<0.000000e+00> : vector<16x128xf32>
    %15 = tpu.matmul %13, %14, %cst_10 {dimension_numbers = #tpu.dot_dimension_numbers<[1], [0], [0], [1], [0, 0, 1, 1], [], []>} : vector<16x64xf32>, vector<64x128xf32>, vector<16x128xf32> -> vector<16x128xf32>
    %c0_11 = arith.constant 0 : index
    %c0_12 = arith.constant 0 : index
    %16 = vector.load %arg5[%c0_11, %c0_12] : memref<1x128xf32, #tpu.memory_space<vmem>>, vector<1x128xf32>
    %17 = vector.broadcast %16 : vector<1x128xf32> to vector<16x128xf32>
    %18 = arith.addf %15, %17 : vector<16x128xf32>
    %19 = tpu.iota {dimensions = array<i32: 1>} : vector<16x128xi32>
    %c16_i32 = arith.constant 16 : i32
    %20 = vector.broadcast %c16_i32 : i32 to vector<16x128xi32>
    %21 = arith.cmpi sge, %19, %20 : vector<16x128xi32>
    %c32_i32 = arith.constant 32 : i32
    %22 = vector.broadcast %c32_i32 : i32 to vector<16x128xi32>
    %23 = arith.cmpi slt, %19, %22 : vector<16x128xi32>
    %24 = arith.andi %21, %23 : vector<16x128xi1>
    %25 = math.exp %18 : vector<16x128xf32>
    %26 = arith.select %24, %25, %18 : vector<16x128xi1>, vector<16x128xf32>
    %c0_13 = arith.constant 0 : index
    %c0_14 = arith.constant 0 : index
    %27 = vector.load %arg6[%c0_13, %c0_14] : memref<16x128xf32, #tpu.memory_space<vmem>>, vector<16x128xf32>
    tpu.vector_store %arg6[%c0_13, %c0_14], %26 {strides = array<i32>} : memref<16x128xf32, #tpu.memory_space<vmem>>, vector<16x128xf32>,
    return
  }
  func.func @transform_0(%arg0: i32) -> (i32, i32) {
    %c0_i32 = arith.constant 0 : i32
    %c0_i32_0 = arith.constant 0 : i32
    return %arg0, %c0_i32 : i32, i32
  }
  func.func @transform_1(%arg0: i32) -> (i32, i32) {
    %c0_i32 = arith.constant 0 : i32
    %c0_i32_0 = arith.constant 0 : i32
    %c0_i32_1 = arith.constant 0 : i32
    return %c0_i32, %c0_i32_0 : i32, i32
  }
  func.func @transform_2(%arg0: i32) -> (i32, i32) {
    %c0_i32 = arith.constant 0 : i32
    %c0_i32_0 = arith.constant 0 : i32
    %c0_i32_1 = arith.constant 0 : i32
    return %c0_i32, %c0_i32_0 : i32, i32
  }
  func.func @transform_3(%arg0: i32) -> (i32, i32) {
    %c0_i32 = arith.constant 0 : i32
    %c0_i32_0 = arith.constant 0 : i32
    %c0_i32_1 = arith.constant 0 : i32
    return %c0_i32, %c0_i32_0 : i32, i32
  }
  func.func @transform_4(%arg0: i32) -> (i32, i32) {
    %c0_i32 = arith.constant 0 : i32
    %c0_i32_0 = arith.constant 0 : i32
    %c0_i32_1 = arith.constant 0 : i32
    return %c0_i32, %c0_i32_0 : i32, i32
  }
  func.func @transform_5(%arg0: i32) -> (i32, i32) {
    %c0_i32 = arith.constant 0 : i32
    %c0_i32_0 = arith.constant 0 : i32
    return %arg0, %c0_i32 : i32, i32
  }
}

</mosaic_0001>

<bundles_post_ra>
// kernel: tpu_custom_call.1
= control target key start
LH: loop header
LB: loop body
LE: loop exit
PB: predicated region body
PF: predicated region fallthrough
CT: control target
= control target key end

     0   :  { %10 = vsyncpa [#allocation3], 0  ;;  %s580_s0 = inlined_call_operand.hbm [shape: f32[16,16], index: 0, kind: input, shape index: {}]   ;;  %s581_s1 = inlined_call_operand.hbm [shape: f32[16,64], index: 1, kind: input, shape index: {}]   ;;  %s582_s2 = inlined_call_operand.vmem [shape: f32[1,64], index: 2, kind: input, shape index: {}]   ;;  %s583_s3 = inlined_call_operand.hbm [shape: f32[64,128], index: 3, kind: input, shape index: {}]   ;;  %s584_s4 = inlined_call_operand.vmem [shape: f32[1,128], index: 4, kind: input, shape index: {}]   ;;  %s585_s5 = inlined_call_operand.hbm [shape: f32[16,128], index: 5, kind: output, shape index: {}]  }
   0x1   :  { %11 = vsyncpa [#allocation6], 0 }
   0x2   :  { %12 = vsyncpa [#allocation4], 0  ;;  %s471_s18 = smov [#allocation5]   ;;  %s472_s20 = smov [#allocation2]  }
   0x3   :  { %s30_s19 = sshll.u32 %s471_s18, 4  ;;  %s18_s21 = sshll.u32 %s472_s20, 4  ;;  %s31_s19 = int_to_ptr.vmem [resolvable:$true] %s30_s19  ;;  %s507_s21 = int_to_ptr.vmem [resolvable:$true] %s18_s21 }
   0x4   :  { %s377_s24 = scalar_lea.hbm %s581_s1, 256 }
   0x5   :  { %p378_p0 = scmp.ne.s32.totalorder %s581_s1, %s377_s24  ;;  %p381_p1 = scmp.lt.u32.totalorder %s377_s24, %s581_s1 }
   0x7   :  { %p383_p2 = pnand %p381_p1, %p378_p0 }
   0x9   :  { %386 = shalt.err (!%p383_p2)
}
   0xa   :  { %s387_s29 = scalar_lea.vmem %s31_s19, 256  ;;  %p392_p4 = scmp.lt.s32.totalorder %s31_s19, %s31_s19 }
   0xb   :  { %p388_p3 = scmp.ne.s32.totalorder %s31_s19, %s387_s29  ;;  %p393_p5 = scmp.lt.s32.totalorder %s387_s29, %s387_s29 }
   0xd   :  { %p394_p6 = por %p393_p5, %p392_p4 }
   0xf   :  { %p395_p7 = pnand %p394_p6, %p388_p3 }
  0x11   :  { %398 = shalt.err (!%p395_p7)
}
  0x12   :  { %s473_s30 = smov 128   ;;  %s474_s6 = smov 8  }
  0x13   :  { %36 = dma.hbm_to_vmem [thread:$0]  %s581_s1, 256, %s31_s19, [#allocation6], %s473_s30, %s473_s30, %s474_s6  }
  0x14   :  { %s399_s11 = scalar_lea.hbm %s580_s0, 256 }
  0x15   :  { %p400_p8 = scmp.ne.s32.totalorder %s580_s0, %s399_s11  ;;  %p403_p9 = scmp.lt.u32.totalorder %s399_s11, %s580_s0 }
  0x17   :  { %p405_p10 = pnand %p403_p9, %p400_p8 }
  0x19   :  { %408 = shalt.err (!%p405_p10)
}
  0x1a   :  { %s409_s16 = scalar_lea.vmem %s507_s21, 256  ;;  %p414_p12 = scmp.lt.s32.totalorder %s507_s21, %s507_s21 }
  0x1b   :  { %p410_p11 = scmp.ne.s32.totalorder %s507_s21, %s409_s16  ;;  %p415_p13 = scmp.lt.s32.totalorder %s409_s16, %s409_s16 }
  0x1d   :  { %p416_p0 = por %p415_p13, %p414_p12 }
  0x1f   :  { %p417_p1 = pnand %p416_p0, %p410_p11 }
  0x21   :  { %420 = shalt.err (!%p417_p1)
}
  0x22   :  { %24 = dma.hbm_to_vmem [thread:$0]  %s580_s0, 256, %s507_s21, [#allocation3], %s473_s30, %s473_s30, %s474_s6  }
  0x23   :  { %s475_s18 = smov [#allocation7]   ;;  %s421_s23 = scalar_lea.hbm %s583_s3, 1024 }
  0x24   :  { %s44_s19 = sshll.u32 %s475_s18, 4  ;;  %p422_p2 = scmp.ne.s32.totalorder %s583_s3, %s421_s23  ;;  %s45_s19 = int_to_ptr.vmem [resolvable:$true] %s44_s19 }
  0x25   :  { %p425_p3 = scmp.lt.u32.totalorder %s421_s23, %s583_s3 }
  0x27   :  { %p427_p4 = pnand %p425_p3, %p422_p2 }
  0x29   :  { %430 = shalt.err (!%p427_p4)
}
  0x2a   :  { %s431_s28 = scalar_lea.vmem %s45_s19, 1024  ;;  %p436_p6 = scmp.lt.s32.totalorder %s45_s19, %s45_s19 }
  0x2b   :  { %p432_p5 = scmp.ne.s32.totalorder %s45_s19, %s431_s28  ;;  %p437_p7 = scmp.lt.s32.totalorder %s431_s28, %s431_s28 }
  0x2d   :  { %p438_p8 = por %p437_p7, %p436_p6 }
  0x2f   :  { %p439_p9 = pnand %p438_p8, %p432_p5 }
  0x31   :  { %442 = shalt.err (!%p439_p9)
}
  0x32   :  { %50 = dma.hbm_to_vmem [thread:$0]  %s583_s3, 1024, %s45_s19, [#allocation6], %s473_s30, %s473_s30, %s474_s6  }
  0x33   :  { %465 = dma.done.wait [#allocation3], 256  }
  0x34   :  { %466 = vsyncadd [#allocation3], 4294967040 }
  0x35   :  { %467 = dma.done.wait [#allocation6], 1280  }
  0x36   :  { %468 = vsyncadd [#allocation6], 4294966016  ;;  %vm73_vm0 = vcmask 130048   ;;  %v64_v0 = vld [vmem:[#allocation5] sm:$0xff]  ;;  %v65_v1 = vld [vmem:[#allocation5 + $0x8] sm:$0xff]  ;;  %vm182_vm1 = vcmask 523264   ;;  %v264_v37 = vlaneseq }
  0x37   :  { %v62_v2 = vld [vmem:[#allocation2] sm:$0xff]  ;;  %v343_v3 = vpack.c.bf16 %v65_v1, %v64_v0  ;;  %v63_v4 = vld [vmem:[#allocation2 + $0x8] sm:$0xff]  ;;  %v169_v8 = vld [vmem:[#allocation7 + $0x10] sm:$0xff]  ;;  %s476_s8 = smov [#allocation8]  }
  0x38   :  { %321 = vmatprep.mubr.msk.f32.mxu0 %vm73_vm0, %v62_v2  ;;  %v167_v5 = vld [vmem:[#allocation7] sm:$0xff]  ;;  %v168_v6 = vld [vmem:[#allocation7 + $0x8] sm:$0xff]  ;;  %v170_v9 = vld [vmem:[#allocation7 + $0x18] sm:$0xff]  ;;  %v265_v40 = vand.u32 127, %v264_v37  ;;  %s282_s9 = sshll.u32 %s476_s8, 4  ;;  %s283_s9 = int_to_ptr.vmem [resolvable:$true] %s282_s9 }
  0x39   :  { %344 = vmatprep.subr.bf16.mxu0 %v343_v3  ;;  %v347_v7 = vpack.c.bf16 %v168_v6, %v167_v5  ;;  %v171_v10 = vld [vmem:[#allocation7 + $0x20] sm:$0xff]  ;;  %v351_v11 = vpack.c.bf16 %v170_v9, %v169_v8  ;;  %v172_v12 = vld [vmem:[#allocation7 + $0x28] sm:$0xff]  ;;  %v173_v14 = vld [vmem:[#allocation7 + $0x30] sm:$0xff]  ;;  %p448_p11 = scmp.lt.s32.totalorder %s283_s9, %s283_s9 }
  0x3a   :  { %346 = vmatpush3.bf16.msra.mxu0 %v343_v3  ;;  %v355_v13 = vpack.c.bf16 %v172_v12, %v171_v10  ;;  %v174_v15 = vld [vmem:[#allocation7 + $0x38] sm:$0xff]  ;;  %v295_v17 = vld [vmem:[%s582_s2] ss:$0 sm:$0xff]  ;;  %vm266_vm4 = vcmp.ge.s32.totalorder %v265_v40, 16  ;;  %vm267_vm5 = vcmp.lt.s32.totalorder %v265_v40, 32 }
  0x3b   :  { %348 = vmatprep.subr.bf16.mxu1 %v347_v7  ;;  %v359_v16 = vpack.c.bf16 %v174_v15, %v173_v14  ;;  %v300_v32 = vld [vmem:[%s584_s4] ss:$0 sm:$0xff]  ;;  %vm268_vm6 = vmand %vm266_vm4, %vm267_vm5  ;;  %s443_s4 = scalar_lea.vmem %s283_s9, 256 }
  0x3c   :  { %350 = vmatpush3.bf16.msra.mxu1 %v347_v7  ;;  %p444_p10 = scmp.ne.s32.totalorder %s283_s9, %s443_s4  ;;  %p449_p12 = scmp.lt.s32.totalorder %s443_s4, %s443_s4 }
  0x3d   :  { %322 = vmatmul.mubr.msk.f32.vlgmr.msra.gmra.mrb[0].mxu0 %vm73_vm0, %v63_v4  ;;  %352 = vmatprep.subr.bf16.mxu1 %v351_v11 }
  0x3e   :  { %p450_p13 = por %p449_p12, %p448_p11 }
  0x40   :  { %354 = vmatpush3.bf16.msra.mxu1 %v351_v11  ;;  %p451_p0 = pnand %p450_p13, %p444_p10 }
  0x41   :  { %356 = vmatprep.subr.bf16.mxu1 %v355_v13 }
  0x44   :  { %358 = vmatpush3.bf16.msra.mxu1 %v355_v13 }
  0x45   :  { %360 = vmatprep.subr.bf16.mxu1 %v359_v16 }
  0x48   :  { %362 = vmatpush3.bf16.msra.mxu1 %v359_v16 }
 0x110   :  { %v323_v18 = vpop.f32.mrb[0].mxu0 }
 0x111   :  { %v152_v19 = vadd.f32 %v323_v18, %v295_v17  ;;  %v146_v20 = vpop.f32.mrb[1].mxu0 }
 0x112   :  { %v147_v21 = vadd.f32 %v295_v17, %v146_v20 }
 0x113   :  { %v158_v22 = vmin.f32 %v152_v19, 0.0  ;;  %vm156_vm3 = vcmp.gt.f32.partialorder %v152_v19, 0.0 }
 0x114   :  { %v157_v23 = vmin.f32 %v147_v21, 0.0  ;;  %vm155_vm2 = vcmp.gt.f32.partialorder %v147_v21, 0.0 }
 0x115   :  { %v161_v24 = vmul.f32 1.442695, %v158_v22 }
 0x116   :  { %v159_v25 = vmul.f32 1.442695, %v157_v23 }
 0x117   :  { %369 = vpow2.f32 %v161_v24 }
 0x118   :  { %371 = vpow2.f32 %v159_v25 }
 0x121   :  { %v370_v26 = vpop.eup %369 }
 0x122   :  { %v372_v27 = vpop.eup %371  ;;  %v299_v28 = vadd.f32 -1.0, %v370_v26 }
 0x123   :  { %v298_v29 = vadd.f32 -1.0, %v372_v27 }
 0x124   :  { %v166_v31 = vsel %vm156_vm3, %v152_v19, %v299_v28 }
 0x125   :  { %v165_v30 = vsel %vm155_vm2, %v147_v21, %v298_v29 }
 0x126   :  { %340 = vmatprep.mubr.msk.f32.mxu1 %vm182_vm1, %v165_v30 }
 0x127   :  { %341 = vmatmul.mubr.msk.f32.vlgmr.msra.gmra.mrb[0].mxu1 %vm182_vm1, %v166_v31 }
 0x1fa   :  { %v342_v33 = vpop.f32.mrb[0].mxu1 }
 0x1fb   :  { %v261_v34 = vadd.f32 %v342_v33, %v300_v32  ;;  %v255_v35 = vpop.f32.mrb[1].mxu1 }
 0x1fc   :  { %v256_v36 = vadd.f32 %v300_v32, %v255_v35 }
 0x1fd   :  { %v271_v38 = vmul.f32 1.442695, %v261_v34 }
 0x1fe   :  { %v269_v39 = vmul.f32 1.442695, %v256_v36 }
 0x1ff   :  { %373 = vpow2.f32 %v271_v38 }
 0x200   :  { %375 = vpow2.f32 %v269_v39 }
 0x209   :  { %v374_v41 = vpop.eup %373 }
 0x20a   :  { %v376_v42 = vpop.eup %375  ;;  %v274_v43 = vsel %vm268_vm6, %v374_v41, %v261_v34 }
 0x20b   :  { %v273_v44 = vsel %vm268_vm6, %v376_v42, %v256_v36  ;;  %276 = vst [vmem:[#allocation8 + $0x8] sm:$0xff] %v274_v43 }
 0x20c   :  { %275 = vst [vmem:[#allocation8] sm:$0xff] %v273_v44 }
 0x20d   :  { %454 = shalt.err (!%p451_p0)
}
 0x20e   :  { %s455_s12 = scalar_lea.hbm %s585_s5, 256 }
 0x20f   :  { %p456_p1 = scmp.ne.s32.totalorder %s585_s5, %s455_s12  ;;  %p459_p2 = scmp.lt.u32.totalorder %s455_s12, %s585_s5 }
 0x211   :  { %p461_p3 = pnand %p459_p2, %p456_p1 }
 0x213   :  { %464 = shalt.err (!%p461_p3)
}
 0x214   :  { %288 = dma.vmem_to_hbm [thread:$0]  %s283_s9, 256, %s585_s5, [#allocation4], %s473_s30, %s473_s30, %s474_s6  }
 0x215   :  { %469 = dma.done.wait [#allocation4], 256  }
 0x216   :  { %470 = vsyncadd [#allocation4], 4294967040 }
 0x217   :  { %292 = vsyncpa [#allocation3], 1 }
 0x218   :  { %293 = vsyncpa [#allocation6], 1 }
 0x219   :  { %294 = vsyncpa [#allocation4], 1 }

</bundles_post_ra>
